<compile_context>
chip_gen: v6e
topology: v6e:2x2x1
jax: 0.10.0
libtpu: 0.0.40
codegen_flags: <defaults>
</compile_context>

<pallas_src>
import math
import jax
import jax.numpy as jnp
from jax import lax
from jax.experimental import pallas as pl
from jax.experimental.pallas import tpu as pltpu

LN_EPS = 1e-5  # PyTorch nn.LayerNorm default


# ----------------------------------------------------------------------------
# glue helpers
# ----------------------------------------------------------------------------
def get_timestep_embedding(timesteps, embedding_dim, max_positions=10000):
    # TODO(synk): get_timestep_embedding was not included in the provided
    # source; this is the standard score-sde sinusoidal timestep embedding.
    half_dim = embedding_dim // 2
    emb = math.log(max_positions) / (half_dim - 1)
    emb = jnp.exp(jnp.arange(half_dim, dtype=jnp.float32) * -emb)
    emb = timesteps.astype(jnp.float32)[:, None] * emb[None, :]
    return jnp.concatenate([jnp.sin(emb), jnp.cos(emb)], axis=1)


def _round_up(x, m):
    return ((x + m - 1) // m) * m


def _full_spec(shape):
    # whole-array block, replicated across the grid
    return pl.BlockSpec(shape, lambda *_, s=shape: (0,) * len(s))


def _block_diag(w, f):
    if f == 1:
        return w
    return jnp.kron(jnp.eye(f, dtype=w.dtype), w)


# ----------------------------------------------------------------------------
# node kernel
#   seq_ref : LN(L2(relu(L1(relu(feats @ W_seq + b)))))           (TM, c_s)
#   rc_ref  : feats @ [W_row || W_col]  (per-node halves of the edge
#             cross-concat projections, consumed by the edge kernel) (TM, 2*c_z)
# ----------------------------------------------------------------------------
def _node_kernel(feat_ref, w_seq_ref, w_rc_ref, node_b_ref,
                 w1_ref, b1_ref, w2_ref, b2_ref, ln_g_ref, ln_b_ref,
                 seq_ref, rc_ref):
    feats = feat_ref[...].astype(jnp.bfloat16)
    rc_ref[...] = jnp.dot(feats, w_rc_ref[...],
                          preferred_element_type=jnp.float32)
    s = jnp.dot(feats, w_seq_ref[...],
                preferred_element_type=jnp.float32) + node_b_ref[...]
    h = jnp.maximum(s, 0.0).astype(jnp.bfloat16)
    h = jnp.dot(h, w1_ref[...], preferred_element_type=jnp.float32) + b1_ref[...]
    h = jnp.maximum(h, 0.0).astype(jnp.bfloat16)
    h = jnp.dot(h, w2_ref[...], preferred_element_type=jnp.float32) + b2_ref[...]
    # one-pass LayerNorm: var = E[x^2] - mean^2 (clamped)
    mu = jnp.mean(h, axis=-1, keepdims=True)
    ms = jnp.mean(h * h, axis=-1, keepdims=True)
    var = jnp.maximum(ms - mu * mu, 0.0)
    seq_ref[...] = (h - mu) * lax.rsqrt(var + LN_EPS) * ln_g_ref[...] + ln_b_ref[...]


# ----------------------------------------------------------------------------
# edge kernel: one (ti, tjf=tj/F) folded tile of the pair matrix, one batch el.
# ----------------------------------------------------------------------------
def _edge_kernel(a1_ref, a2_ref, rowpre_ref, bs1_ref, bs2_ref, colpre_ref,
                 xr_ref, xcol_ref, sqb_ref,
                 w_pos_ref, w_dist_ref, b_all_ref,
                 w1_ref, mb1_ref, w2_ref, mb2_ref, pmean_ref,
                 ln_g_ref, ln_b_ref, out_ref):
    _, ti, tjf, fcz = out_ref.shape
    fpd = a1_ref.shape[-1]
    fnb = sqb_ref.shape[-1]
    m4 = ti * tjf

    # relative positional sinusoid via angle addition, built directly in the
    # F-folded lane layout:
    #   sin(a_i - a_j) = s_i c_j - c_i s_j ;  cos(a_i - a_j) = c_i c_j + s_i s_j
    # a1 = tile([s|c]), a2 = tile([c|s]); bs1 = fold([c|c]), bs2 = fold([-s|s])
    a1, a2 = a1_ref[0], a2_ref[0]            # (ti,  fpd)
    b1, b2 = bs1_ref[0], bs2_ref[0]          # (tjf, fpd)
    rel = a1[:, None, :] * b1[None, :, :] + a2[:, None, :] * b2[None, :, :]
    relb = rel.astype(jnp.bfloat16).reshape(m4, fpd)
    e = jnp.dot(relb, w_pos_ref[...], preferred_element_type=jnp.float32)

    # recycled-structure distogram (cumulative-bin trick, folded layout).
    xr = xr_ref[0]                           # (ti, 3)
    d2 = jnp.zeros((ti, tjf, fnb), jnp.float32)
    for c in range(3):
        rc = xr[:, c:c + 1]                  # (ti, 1)
        cc = xcol_ref[0, c]                  # (tjf, fnb)  pre-folded/repeated
        diff = rc[:, None, :] - cc[None, :, :]
        d2 = d2 + diff * diff
    g = (d2 > sqb_ref[0]).astype(jnp.bfloat16).reshape(m4, fnb)
    e = e + jnp.dot(g, w_dist_ref[...], preferred_element_type=jnp.float32)
    e = e + b_all_ref[...]                   # all projection biases, pre-summed

    # per-node cross-concat projections (precomputed by the node kernel)
    e = (e.reshape(ti, tjf, fcz)
         + rowpre_ref[0][:, None, :] + colpre_ref[0][None, :, :])

    # edge_embedder: ReLU -> Linear -> ReLU -> Linear -> LayerNorm (per group)
    h = jnp.maximum(e, 0.0).astype(jnp.bfloat16).reshape(m4, fcz)
    h = jnp.dot(h, w1_ref[...], preferred_element_type=jnp.float32) + mb1_ref[...]
    h = jnp.maximum(h, 0.0).astype(jnp.bfloat16)
    h = jnp.dot(h, w2_ref[...], preferred_element_type=jnp.float32) + mb2_ref[...]
    # group LayerNorm via MXU group-mean projection (block-diag 1/c_z matrix)
    mu = jnp.dot(h.astype(jnp.bfloat16), pmean_ref[...],
                 preferred_element_type=jnp.float32)
    xc = h - mu
    var = jnp.dot((xc * xc).astype(jnp.bfloat16), pmean_ref[...],
                  preferred_element_type=jnp.float32)
    out = xc * lax.rsqrt(jnp.maximum(var, 0.0) + LN_EPS) * ln_g_ref[...] + ln_b_ref[...]
    out_ref[0] = out.reshape(ti, tjf, fcz)   # minor dim fcz = 128 -> dense stores


# ----------------------------------------------------------------------------
# parameter initialization (deterministic, synthetic)
# ----------------------------------------------------------------------------
def init_params(key, cfg):
    c_s, c_z = cfg['c_s'], cfg['c_z']
    tf, pd = cfg['tf_dim'], cfg['pos_emb_dim']
    tpd = cfg['time_emb_dim'] + (1 if cfg['embed_fixed'] else 0)
    nb = cfg['recyc_struct_no_bin']
    keys = iter(jax.random.split(key, 64))

    def lin(din, dout, scale=0.05):
        w = scale * jax.random.normal(next(keys), (din, dout), jnp.float32)
        b = scale * jax.random.normal(next(keys), (1, dout), jnp.float32)
        return w, b

    p = {}
    p['node_pos_w'], p['node_pos_b'] = lin(pd, c_s)
    p['node_tf_w'], p['node_tf_b'] = lin(tf, c_s)
    p['node_time_w'], p['node_time_b'] = lin(tpd, c_s)
    p['node_mlp1_w'], p['node_mlp1_b'] = lin(c_s, c_s)
    p['node_mlp2_w'], p['node_mlp2_b'] = lin(c_s, c_s)
    p['node_ln_g'] = jnp.ones((1, c_s), jnp.float32)
    p['node_ln_b'] = jnp.zeros((1, c_s), jnp.float32)

    p['edge_pos_w'], p['edge_pos_b'] = lin(pd, c_z)
    p['edge_tf_w'], p['edge_tf_b'] = lin(2 * tf, c_z)
    p['edge_time_w'], p['edge_time_b'] = lin(2 * tpd, c_z)
    p['edge_rec_w'], p['edge_rec_b'] = lin(nb, c_z)
    p['edge_mlp1_w'], p['edge_mlp1_b'] = lin(c_z, c_z)
    p['edge_mlp2_w'], p['edge_mlp2_b'] = lin(c_z, c_z)
    p['edge_ln_g'] = jnp.ones((1, c_z), jnp.float32)
    p['edge_ln_b'] = jnp.zeros((1, c_z), jnp.float32)
    return p


# ----------------------------------------------------------------------------
# forward wrapper (glue + two pallas_calls)
# ----------------------------------------------------------------------------
def input_embedder2_forward(params, feat, prev_frame_trans_t, cfg):
    f32, bf16 = jnp.float32, jnp.bfloat16
    B, N = feat['seq_idx'].shape
    c_s, c_z = cfg['c_s'], cfg['c_z']
    tf_dim, pd = cfg['tf_dim'], cfg['pos_emb_dim']
    hd = pd // 2
    tpd = cfg['time_emb_dim'] + (1 if cfg['embed_fixed'] else 0)
    nb = cfg['recyc_struct_no_bin']
    dk = pd + tf_dim + tpd

    # fold factor: pack F pair-columns into the 128-lane dim
    F = (128 // c_z) if (c_z < 128 and 128 % c_z == 0) else 1
    fpd, fcz, fnb = F * pd, F * c_z, F * nb

    seq_idx_f = feat['seq_idx'].astype(f32)

    # per-node sinusoids (only O(N) transcendentals; edge kernel uses angle
    # addition to reconstruct the relative-position sinusoid)
    k = jnp.arange(hd, dtype=f32)
    freq = math.pi / jnp.power(float(cfg['pos_emb_max_positions']), 2.0 * k / pd)
    ang_n = seq_idx_f[..., None] * freq                      # (B, N, hd)
    sin_n, cos_n = jnp.sin(ang_n), jnp.cos(ang_n)
    pos_node = jnp.concatenate([sin_n, cos_n], axis=-1)      # == get_index_embedding

    # per-residue timestep embedding
    t_per_res = feat['timestep'][:, None] * feat['frame_mask']
    te = get_timestep_embedding(t_per_res.reshape(-1), cfg['time_emb_dim'],
                                cfg['time_emb_max_positions']).reshape(B, N, -1)
    if cfg['embed_fixed']:
        te = jnp.concatenate([te, feat['frame_mask'][..., None]], axis=-1)

    # fused per-node feature slab and fused node-side weights
    node_feats = jnp.concatenate([pos_node, feat['seq_feat'], te],
                                 axis=-1).reshape(B * N, dk)
    w_tf_i, w_tf_j = params['edge_tf_w'][:tf_dim], params['edge_tf_w'][tf_dim:]
    w_time_i, w_time_j = params['edge_time_w'][:tpd], params['edge_time_w'][tpd:]
    z_pd = jnp.zeros((pd, c_z), f32)
    w_seq = jnp.concatenate([params['node_pos_w'], params['node_tf_w'],
                             params['node_time_w']], axis=0)       # (dk, c_s)
    w_row = jnp.concatenate([z_pd, w_tf_i, w_time_i], axis=0)      # (dk, c_z)
    w_col = jnp.concatenate([z_pd, w_tf_j, w_time_j], axis=0)      # (dk, c_z)
    w_rc = jnp.concatenate([w_row, w_col], axis=1)                  # (dk, 2*c_z)

    node_b_all = params['node_pos_b'] + params['node_tf_b'] + params['node_time_b']
    edge_b_all = (params['edge_pos_b'] + params['edge_tf_b']
                  + params['edge_time_b'] + params['edge_rec_b'])

    # ---- node kernel -------------------------------------------------------
    bn = B * N
    tm = min(512, _round_up(bn, 8))
    bn_p = _round_up(bn, tm)
    nfp = node_feats if bn_p == bn else jnp.pad(node_feats, ((0, bn_p - bn), (0, 0)))

    seq_flat, rc_flat = pl.pallas_call(
        _node_kernel,
        out_shape=(jax.ShapeDtypeStruct((bn_p, c_s), f32),
                   jax.ShapeDtypeStruct((bn_p, 2 * c_z), f32)),
        grid=(bn_p // tm,),
        in_specs=[
            pl.BlockSpec((tm, dk), lambda r: (r, 0)),
            _full_spec((dk, c_s)), _full_spec((dk, 2 * c_z)), _full_spec((1, c_s)),
            _full_spec((c_s, c_s)), _full_spec((1, c_s)),
            _full_spec((c_s, c_s)), _full_spec((1, c_s)),
            _full_spec((1, c_s)), _full_spec((1, c_s)),
        ],
        out_specs=(pl.BlockSpec((tm, c_s), lambda r: (r, 0)),
                   pl.BlockSpec((tm, 2 * c_z), lambda r: (r, 0))),
        compiler_params=pltpu.CompilerParams(dimension_semantics=("parallel",)),
    )(nfp, w_seq.astype(bf16), w_rc.astype(bf16), node_b_all,
      params['node_mlp1_w'].astype(bf16), params['node_mlp1_b'],
      params['node_mlp2_w'].astype(bf16), params['node_mlp2_b'],
      params['node_ln_g'], params['node_ln_b'])

    seq_emb = seq_flat[:bn].reshape(B, N, c_s)
    rc = rc_flat[:bn].reshape(B, N, 2 * c_z)
    row_pre, col_pre = rc[..., :c_z], rc[..., c_z:]

    # ---- edge kernel: folded, tiled over the pair matrix -------------------
    # pair tiles: multiple of max(8, F), capped at 128; pad instead of ever
    # emitting a full-N tile.
    unit = max(8, F)
    tile = min(128, _round_up(N, unit))
    n_p = _round_up(N, tile)
    ti, tj = tile, tile
    tjf = tj // F

    def pad_n(a):
        if n_p == N:
            return a
        return jnp.pad(a, ((0, 0), (0, n_p - N)) + ((0, 0),) * (a.ndim - 2))

    sin_p, cos_p = pad_n(sin_n), pad_n(cos_n)
    a1 = jnp.tile(jnp.concatenate([sin_p, cos_p], -1), (1, 1, F))   # (B, n_p, fpd)
    a2 = jnp.tile(jnp.concatenate([cos_p, sin_p], -1), (1, 1, F))
    bs1 = jnp.concatenate([cos_p, cos_p], -1).reshape(B, n_p // F, fpd)
    bs2 = jnp.concatenate([-sin_p, sin_p], -1).reshape(B, n_p // F, fpd)

    rowpre = jnp.tile(pad_n(row_pre), (1, 1, F))                    # (B, n_p, fcz)
    colpre = pad_n(col_pre).reshape(B, n_p // F, fcz)

    x = pad_n(prev_frame_trans_t.astype(f32))                       # (B, n_p, 3)
    xcol = jnp.repeat(jnp.transpose(x, (0, 2, 1)), nb,
                      axis=-1).reshape(B, 3, n_p // F, fnb)

    # cumulative-bin distogram weights: onehot @ W_rec == (d2 > sqb) @ W_diff
    w_rec = params['edge_rec_w']
    w_diff = jnp.concatenate([w_rec[:1], w_rec[1:] - w_rec[:-1]], axis=0)
    bins = jnp.linspace(cfg['recyc_struct_min_bin'], cfg['recyc_struct_max_bin'],
                        nb, dtype=f32)
    sqb_rep = jnp.tile((bins ** 2).reshape(1, nb), (1, F))

    # block-diagonal (folded) weights, bf16 for the MXU
    w_pos4 = _block_diag(params['edge_pos_w'], F).astype(bf16)      # (fpd, fcz)
    w_dist4 = _block_diag(w_diff, F).astype(bf16)                   # (fnb, fcz)
    w1_4 = _block_diag(params['edge_mlp1_w'], F).astype(bf16)
    w2_4 = _block_diag(params['edge_mlp2_w'], F).astype(bf16)
    pmean4 = _block_diag(jnp.full((c_z, c_z), 1.0 / c_z, f32), F).astype(bf16)
    b_all4 = jnp.tile(edge_b_all, (1, F))
    mb1_4 = jnp.tile(params['edge_mlp1_b'], (1, F))
    mb2_4 = jnp.tile(params['edge_mlp2_b'], (1, F))
    ln_g4 = jnp.tile(params['edge_ln_g'], (1, F))
    ln_b4 = jnp.tile(params['edge_ln_b'], (1, F))

    edge_folded = pl.pallas_call(
        _edge_kernel,
        out_shape=jax.ShapeDtypeStruct((B, n_p, n_p // F, fcz), f32),
        grid=(B, n_p // ti, n_p // tj),
        in_specs=[
            pl.BlockSpec((1, ti, fpd), lambda b, i, j: (b, i, 0)),       # a1 (rows)
            pl.BlockSpec((1, ti, fpd), lambda b, i, j: (b, i, 0)),       # a2 (rows)
            pl.BlockSpec((1, ti, fcz), lambda b, i, j: (b, i, 0)),       # row pre-proj
            pl.BlockSpec((1, tjf, fpd), lambda b, i, j: (b, j, 0)),      # bs1 (cols)
            pl.BlockSpec((1, tjf, fpd), lambda b, i, j: (b, j, 0)),      # bs2 (cols)
            pl.BlockSpec((1, tjf, fcz), lambda b, i, j: (b, j, 0)),      # col pre-proj
            pl.BlockSpec((1, ti, 3), lambda b, i, j: (b, i, 0)),         # CA coords rows
            pl.BlockSpec((1, 3, tjf, fnb), lambda b, i, j: (b, 0, j, 0)),  # CA coords cols
            _full_spec((1, fnb)),
            _full_spec((fpd, fcz)), _full_spec((fnb, fcz)), _full_spec((1, fcz)),
            _full_spec((fcz, fcz)), _full_spec((1, fcz)),
            _full_spec((fcz, fcz)), _full_spec((1, fcz)),
            _full_spec((fcz, fcz)),
            _full_spec((1, fcz)), _full_spec((1, fcz)),
        ],
        out_specs=pl.BlockSpec((1, ti, tjf, fcz), lambda b, i, j: (b, i, j, 0)),
        compiler_params=pltpu.CompilerParams(
            dimension_semantics=("parallel", "parallel", "parallel"),
            vmem_limit_bytes=48 * 1024 * 1024),
    )(a1, a2, rowpre, bs1, bs2, colpre, x, xcol, sqb_rep,
      w_pos4, w_dist4, b_all4, w1_4, mb1_4, w2_4, mb2_4, pmean4, ln_g4, ln_b4)

    edge_emb = edge_folded.reshape(B, n_p, n_p, c_z)   # free (row-major compatible)
    if n_p != N:
        edge_emb = edge_emb[:, :N, :N, :]
    return seq_emb, edge_emb, {}


# ----------------------------------------------------------------------------
if __name__ == "__main__":
    cfg = dict(
        tf_dim=22,                     # 21 one-hot + 1 chain idx
        pos_emb_dim=32,
        time_emb_dim=32,
        embed_fixed=True,              # time_proj_dim = time_emb_dim + 1
        time_emb_max_positions=10000,
        pos_emb_max_positions=2056,
        recyc_struct=True,
        recyc_struct_min_bin=3.25,
        recyc_struct_max_bin=20.75,
        recyc_struct_no_bin=15,
        c_s=64,
        c_z=32,
        inf=1e9,
        eps=1e-8,
    )
    # TODO(synk): topo_embedder branches (topo_mode 2/3) are disabled in this
    # config (config.topo_embedder.enabled = False), so they are not exercised.

    B, N = 2, 16
    key = jax.random.PRNGKey(0)
    k_param, k_feat, k_t, k_mask, k_x = jax.random.split(key, 5)
    params = init_params(k_param, cfg)

    feat = {
        'seq_idx': jnp.tile(jnp.arange(N, dtype=jnp.int32)[None, :], (B, 1)),
        'seq_feat': jax.random.normal(k_feat, (B, N, cfg['tf_dim']), jnp.float32),
        'timestep': jax.random.uniform(k_t, (B,), jnp.float32, 0.0, 1000.0),
        'frame_mask': (jax.random.uniform(k_mask, (B, N)) > 0.2).astype(jnp.float32),
    }
    # prev[2] : frame_trans_t — denoised CA coordinates (self-conditioning)
    prev_frame_trans_t = 5.0 * jax.random.normal(k_x, (B, N, 3), jnp.float32)

    seq_emb, edge_emb, out_dict = input_embedder2_forward(
        params, feat, prev_frame_trans_t, cfg)
    jax.block_until_ready((seq_emb, edge_emb))

    assert seq_emb.shape == (B, N, cfg['c_s'])
    assert edge_emb.shape == (B, N, N, cfg['c_z'])
    assert bool(jnp.isfinite(seq_emb).all()) and bool(jnp.isfinite(edge_emb).all())
    print("KERNEL_OK")
</pallas_src>

<mosaic_0001>
module attributes {stable_mosaic.version = 11 : i64} {
  func.func @_node_kernel(%arg0: i32, %arg1: memref<32x87xf32, #tpu.memory_space<vmem>>, %arg2: memref<87x64xbf16, #tpu.memory_space<vmem>>, %arg3: memref<87x64xbf16, #tpu.memory_space<vmem>>, %arg4: memref<1x64xf32, #tpu.memory_space<vmem>>, %arg5: memref<64x64xbf16, #tpu.memory_space<vmem>>, %arg6: memref<1x64xf32, #tpu.memory_space<vmem>>, %arg7: memref<64x64xbf16, #tpu.memory_space<vmem>>, %arg8: memref<1x64xf32, #tpu.memory_space<vmem>>, %arg9: memref<1x64xf32, #tpu.memory_space<vmem>>, %arg10: memref<1x64xf32, #tpu.memory_space<vmem>>, %arg11: memref<32x64xf32, #tpu.memory_space<vmem>>, %arg12: memref<32x64xf32, #tpu.memory_space<vmem>>) attributes {dimension_semantics = [#tpu.dimension_semantics<parallel>], iteration_bounds = array<i64: 1>, scalar_prefetch = 0 : i64, scratch_operands = 0 : i64, tpu.core_type = #tpu.core_type<tc>, window_params = [{transform_indices = @transform_0, window_bounds = array<i64: 32, 87>}, {pipeline_mode = #tpu.pipeline_mode<synchronous>, transform_indices = @transform_1, window_bounds = array<i64: 87, 64>}, {pipeline_mode = #tpu.pipeline_mode<synchronous>, transform_indices = @transform_2, window_bounds = array<i64: 87, 64>}, {pipeline_mode = #tpu.pipeline_mode<synchronous>, transform_indices = @transform_3, window_bounds = array<i64: 1, 64>}, {pipeline_mode = #tpu.pipeline_mode<synchronous>, transform_indices = @transform_4, window_bounds = array<i64: 64, 64>}, {pipeline_mode = #tpu.pipeline_mode<synchronous>, transform_indices = @transform_5, window_bounds = array<i64: 1, 64>}, {pipeline_mode = #tpu.pipeline_mode<synchronous>, transform_indices = @transform_6, window_bounds = array<i64: 64, 64>}, {pipeline_mode = #tpu.pipeline_mode<synchronous>, transform_indices = @transform_7, window_bounds = array<i64: 1, 64>}, {pipeline_mode = #tpu.pipeline_mode<synchronous>, transform_indices = @transform_8, window_bounds = array<i64: 1, 64>}, {pipeline_mode = #tpu.pipeline_mode<synchronous>, transform_indices = @transform_9, window_bounds = array<i64: 1, 64>}, {transform_indices = @transform_10, window_bounds = array<i64: 32, 64>}, {transform_indices = @transform_11, window_bounds = array<i64: 32, 64>}]} {
    %c0 = arith.constant 0 : index
    %c0_0 = arith.constant 0 : index
    %0 = vector.load %arg1[%c0, %c0_0] : memref<32x87xf32, #tpu.memory_space<vmem>>, vector<32x87xf32>
    %1 = arith.truncf %0 : vector<32x87xf32> to vector<32x87xbf16>
    %c0_1 = arith.constant 0 : index
    %c0_2 = arith.constant 0 : index
    %2 = vector.load %arg3[%c0_1, %c0_2] : memref<87x64xbf16, #tpu.memory_space<vmem>>, vector<87x64xbf16>
    %cst = arith.constant dense<0.000000e+00> : vector<32x64xf32>
    %3 = tpu.matmul %1, %2, %cst {dimension_numbers = #tpu.dot_dimension_numbers<[1], [0], [0], [1], [0, 0, 1, 1], [], []>} : vector<32x87xbf16>, vector<87x64xbf16>, vector<32x64xf32> -> vector<32x64xf32>
    %c0_3 = arith.constant 0 : index
    %c0_4 = arith.constant 0 : index
    %4 = vector.load %arg12[%c0_3, %c0_4] : memref<32x64xf32, #tpu.memory_space<vmem>>, vector<32x64xf32>
    tpu.vector_store %arg12[%c0_3, %c0_4], %3 {strides = array<i32>} : memref<32x64xf32, #tpu.memory_space<vmem>>, vector<32x64xf32>,
    %c0_5 = arith.constant 0 : index
    %c0_6 = arith.constant 0 : index
    %5 = vector.load %arg2[%c0_5, %c0_6] : memref<87x64xbf16, #tpu.memory_space<vmem>>, vector<87x64xbf16>
    %cst_7 = arith.constant dense<0.000000e+00> : vector<32x64xf32>
    %6 = tpu.matmul %1, %5, %cst_7 {dimension_numbers = #tpu.dot_dimension_numbers<[1], [0], [0], [1], [0, 0, 1, 1], [], []>} : vector<32x87xbf16>, vector<87x64xbf16>, vector<32x64xf32> -> vector<32x64xf32>
    %c0_8 = arith.constant 0 : index
    %c0_9 = arith.constant 0 : index
    %7 = vector.load %arg4[%c0_8, %c0_9] : memref<1x64xf32, #tpu.memory_space<vmem>>, vector<1x64xf32>
    %8 = vector.broadcast %7 : vector<1x64xf32> to vector<32x64xf32>
    %9 = arith.addf %6, %8 : vector<32x64xf32>
    %cst_10 = arith.constant 0.000000e+00 : f32
    %10 = vector.broadcast %cst_10 : f32 to vector<32x64xf32>
    %11 = arith.maximumf %9, %10 : vector<32x64xf32>
    %12 = arith.truncf %11 : vector<32x64xf32> to vector<32x64xbf16>
    %c0_11 = arith.constant 0 : index
    %c0_12 = arith.constant 0 : index
    %13 = vector.load %arg5[%c0_11, %c0_12] : memref<64x64xbf16, #tpu.memory_space<vmem>>, vector<64x64xbf16>
    %cst_13 = arith.constant dense<0.000000e+00> : vector<32x64xf32>
    %14 = tpu.matmul %12, %13, %cst_13 {dimension_numbers = #tpu.dot_dimension_numbers<[1], [0], [0], [1], [0, 0, 1, 1], [], []>} : vector<32x64xbf16>, vector<64x64xbf16>, vector<32x64xf32> -> vector<32x64xf32>
    %c0_14 = arith.constant 0 : index
    %c0_15 = arith.constant 0 : index
    %15 = vector.load %arg6[%c0_14, %c0_15] : memref<1x64xf32, #tpu.memory_space<vmem>>, vector<1x64xf32>
    %16 = vector.broadcast %15 : vector<1x64xf32> to vector<32x64xf32>
    %17 = arith.addf %14, %16 : vector<32x64xf32>
    %cst_16 = arith.constant 0.000000e+00 : f32
    %18 = vector.broadcast %cst_16 : f32 to vector<32x64xf32>
    %19 = arith.maximumf %17, %18 : vector<32x64xf32>
    %20 = arith.truncf %19 : vector<32x64xf32> to vector<32x64xbf16>
    %c0_17 = arith.constant 0 : index
    %c0_18 = arith.constant 0 : index
    %21 = vector.load %arg7[%c0_17, %c0_18] : memref<64x64xbf16, #tpu.memory_space<vmem>>, vector<64x64xbf16>
    %cst_19 = arith.constant dense<0.000000e+00> : vector<32x64xf32>
    %22 = tpu.matmul %20, %21, %cst_19 {dimension_numbers = #tpu.dot_dimension_numbers<[1], [0], [0], [1], [0, 0, 1, 1], [], []>} : vector<32x64xbf16>, vector<64x64xbf16>, vector<32x64xf32> -> vector<32x64xf32>
    %c0_20 = arith.constant 0 : index
    %c0_21 = arith.constant 0 : index
    %23 = vector.load %arg8[%c0_20, %c0_21] : memref<1x64xf32, #tpu.memory_space<vmem>>, vector<1x64xf32>
    %24 = vector.broadcast %23 : vector<1x64xf32> to vector<32x64xf32>
    %25 = arith.addf %22, %24 : vector<32x64xf32>
    %cst_22 = arith.constant dense<0.000000e+00> : vector<32xf32>
    %26 = vector.multi_reduction <add>, %25, %cst_22 [1] : vector<32x64xf32> to vector<32xf32>
    %27 = vector.shape_cast %26 : vector<32xf32> to vector<32x1xf32>
    %cst_23 = arith.constant 6.400000e+01 : f32
    %28 = vector.broadcast %cst_23 : f32 to vector<32x1xf32>
    %29 = arith.divf %27, %28 : vector<32x1xf32>
    %30 = arith.mulf %25, %25 : vector<32x64xf32>
    %cst_24 = arith.constant dense<0.000000e+00> : vector<32xf32>
    %31 = vector.multi_reduction <add>, %30, %cst_24 [1] : vector<32x64xf32> to vector<32xf32>
    %32 = vector.shape_cast %31 : vector<32xf32> to vector<32x1xf32>
    %cst_25 = arith.constant 6.400000e+01 : f32
    %33 = vector.broadcast %cst_25 : f32 to vector<32x1xf32>
    %34 = arith.divf %32, %33 : vector<32x1xf32>
    %35 = arith.mulf %29, %29 : vector<32x1xf32>
    %36 = arith.subf %34, %35 : vector<32x1xf32>
    %cst_26 = arith.constant 0.000000e+00 : f32
    %37 = vector.broadcast %cst_26 : f32 to vector<32x1xf32>
    %38 = arith.maximumf %36, %37 : vector<32x1xf32>
    %39 = vector.broadcast %29 : vector<32x1xf32> to vector<32x64xf32>
    %40 = arith.subf %25, %39 : vector<32x64xf32>
    %cst_27 = arith.constant 9.99999974E-6 : f32
    %41 = vector.broadcast %cst_27 : f32 to vector<32x1xf32>
    %42 = arith.addf %38, %41 : vector<32x1xf32>
    %43 = math.rsqrt %42 : vector<32x1xf32>
    %44 = vector.broadcast %43 : vector<32x1xf32> to vector<32x64xf32>
    %45 = arith.mulf %40, %44 : vector<32x64xf32>
    %c0_28 = arith.constant 0 : index
    %c0_29 = arith.constant 0 : index
    %46 = vector.load %arg9[%c0_28, %c0_29] : memref<1x64xf32, #tpu.memory_space<vmem>>, vector<1x64xf32>
    %47 = vector.broadcast %46 : vector<1x64xf32> to vector<32x64xf32>
    %48 = arith.mulf %45, %47 : vector<32x64xf32>
    %c0_30 = arith.constant 0 : index
    %c0_31 = arith.constant 0 : index
    %49 = vector.load %arg10[%c0_30, %c0_31] : memref<1x64xf32, #tpu.memory_space<vmem>>, vector<1x64xf32>
    %50 = vector.broadcast %49 : vector<1x64xf32> to vector<32x64xf32>
    %51 = arith.addf %48, %50 : vector<32x64xf32>
    %c0_32 = arith.constant 0 : index
    %c0_33 = arith.constant 0 : index
    %52 = vector.load %arg11[%c0_32, %c0_33] : memref<32x64xf32, #tpu.memory_space<vmem>>, vector<32x64xf32>
    tpu.vector_store %arg11[%c0_32, %c0_33], %51 {strides = array<i32>} : memref<32x64xf32, #tpu.memory_space<vmem>>, vector<32x64xf32>,
    return
  }
  func.func @transform_0(%arg0: i32) -> (i32, i32) {
    %c0_i32 = arith.constant 0 : i32
    %c0_i32_0 = arith.constant 0 : i32
    return %arg0, %c0_i32 : i32, i32
  }
  func.func @transform_1(%arg0: i32) -> (i32, i32) {
    %c0_i32 = arith.constant 0 : i32
    %c0_i32_0 = arith.constant 0 : i32
    %c0_i32_1 = arith.constant 0 : i32
    return %c0_i32, %c0_i32_0 : i32, i32
  }
  func.func @transform_2(%arg0: i32) -> (i32, i32) {
    %c0_i32 = arith.constant 0 : i32
    %c0_i32_0 = arith.constant 0 : i32
    %c0_i32_1 = arith.constant 0 : i32
    return %c0_i32, %c0_i32_0 : i32, i32
  }
  func.func @transform_3(%arg0: i32) -> (i32, i32) {
    %c0_i32 = arith.constant 0 : i32
    %c0_i32_0 = arith.constant 0 : i32
    %c0_i32_1 = arith.constant 0 : i32
    return %c0_i32, %c0_i32_0 : i32, i32
  }
  func.func @transform_4(%arg0: i32) -> (i32, i32) {
    %c0_i32 = arith.constant 0 : i32
    %c0_i32_0 = arith.constant 0 : i32
    %c0_i32_1 = arith.constant 0 : i32
    return %c0_i32, %c0_i32_0 : i32, i32
  }
  func.func @transform_5(%arg0: i32) -> (i32, i32) {
    %c0_i32 = arith.constant 0 : i32
    %c0_i32_0 = arith.constant 0 : i32
    %c0_i32_1 = arith.constant 0 : i32
    return %c0_i32, %c0_i32_0 : i32, i32
  }
  func.func @transform_6(%arg0: i32) -> (i32, i32) {
    %c0_i32 = arith.constant 0 : i32
    %c0_i32_0 = arith.constant 0 : i32
    %c0_i32_1 = arith.constant 0 : i32
    return %c0_i32, %c0_i32_0 : i32, i32
  }
  func.func @transform_7(%arg0: i32) -> (i32, i32) {
    %c0_i32 = arith.constant 0 : i32
    %c0_i32_0 = arith.constant 0 : i32
    %c0_i32_1 = arith.constant 0 : i32
    return %c0_i32, %c0_i32_0 : i32, i32
  }
  func.func @transform_8(%arg0: i32) -> (i32, i32) {
    %c0_i32 = arith.constant 0 : i32
    %c0_i32_0 = arith.constant 0 : i32
    %c0_i32_1 = arith.constant 0 : i32
    return %c0_i32, %c0_i32_0 : i32, i32
  }
  func.func @transform_9(%arg0: i32) -> (i32, i32) {
    %c0_i32 = arith.constant 0 : i32
    %c0_i32_0 = arith.constant 0 : i32
    %c0_i32_1 = arith.constant 0 : i32
    return %c0_i32, %c0_i32_0 : i32, i32
  }
  func.func @transform_10(%arg0: i32) -> (i32, i32) {
    %c0_i32 = arith.constant 0 : i32
    %c0_i32_0 = arith.constant 0 : i32
    return %arg0, %c0_i32 : i32, i32
  }
  func.func @transform_11(%arg0: i32) -> (i32, i32) {
    %c0_i32 = arith.constant 0 : i32
    %c0_i32_0 = arith.constant 0 : i32
    return %arg0, %c0_i32 : i32, i32
  }
}

</mosaic_0001>

<bundles_post_ra>
// kernel: tpu_custom_call.1
= control target key start
LH: loop header
LB: loop body
LE: loop exit
PB: predicated region body
PF: predicated region fallthrough
CT: control target
= control target key end

     0   :  { %17 = vsyncpa [#allocation3], 0  ;;  %vm97_vm0 = vcmask 1042432   ;;  %vm98_vm1 = vcmask 1043456   ;;  %v778_v0 = vmov 65535   ;;  %vm90_vm2 = vcmask 711680   ;;  %s990_s0 = inlined_call_operand.vmem [shape: f32[32,87], index: 0, kind: input, shape index: {}]   ;;  %s991_s1 = inlined_call_operand.vmem [shape: bf16[87,64], index: 1, kind: input, shape index: {}]   ;;  %s992_s2 = inlined_call_operand.vmem [shape: bf16[87,64], index: 2, kind: input, shape index: {}]   ;;  %s993_s3 = inlined_call_operand.vmem [shape: f32[1,64], index: 3, kind: input, shape index: {}]   ;;  %s994_s4 = inlined_call_operand.vmem [shape: bf16[64,64], index: 4, kind: input, shape index: {}]   ;;  %s995_s5 = inlined_call_operand.vmem [shape: f32[1,64], index: 5, kind: input, shape index: {}]   ;;  %s996_s6 = inlined_call_operand.vmem [shape: bf16[64,64], index: 6, kind: input, shape index: {}]   ;;  %s997_s7 = inlined_call_operand.vmem [shape: f32[1,64], index: 7, kind: input, shape index: {}]   ;;  %s998_s8 = inlined_call_operand.vmem [shape: f32[1,64], index: 8, kind: input, shape index: {}]   ;;  %s999_s9 = inlined_call_operand.vmem [shape: f32[1,64], index: 9, kind: input, shape index: {}]   ;;  %s1000_s10 = inlined_call_operand.hbm [shape: f32[32,64], index: 10, kind: output, shape index: {0}]   ;;  %s1001_s11 = inlined_call_operand.hbm [shape: f32[32,64], index: 11, kind: output, shape index: {1}]  }
   0x1   :  { %v99_v1 = vsel %vm97_vm0, 4294967295, %v778_v0  ;;  %v706_v2 = vld [vmem:[%s991_s1 + $0x28] ss:$0 sps:$4 sm:$0xff]   ;;  %v707_v4 = vld [vmem:[%s991_s1 + $0x20] sm:$0xff]   ;;  %v708_v8 = vld [vmem:[%s991_s1 + $0x18] sm:$0xff]  }
   0x2   :  { %v100_v3 = vsel %vm98_vm1, %v99_v1, 0  ;;  %v40_v6 = vld [vmem:[%s990_s0] sm:$0xff]  ;;  %v41_v7 = vld [vmem:[%s990_s0 + $0x8] sm:$0xff]  ;;  %v709_v13 = vld [vmem:[%s991_s1 + $0x10] sm:$0xff]  }
   0x3   :  { %v210_v5 = vand.u32 %v706_v2, %v100_v3  ;;  %v44_v9 = vpack.c.bf16 %v41_v7, %v40_v6  ;;  %v712_v10 = vld [vmem:[%s992_s2 + $0x28] ss:$0 sps:$4 sm:$0xff]   ;;  %v713_v12 = vld [vmem:[%s992_s2 + $0x20] sm:$0xff]   ;;  %v714_v15 = vld [vmem:[%s992_s2 + $0x18] sm:$0xff]  }
   0x4   :  { %v102_v11 = vand.u32 %v712_v10, %v100_v3  ;;  %v710_v14 = vld [vmem:[%s991_s1 + $0x8] sm:$0xff]   ;;  %v715_v16 = vld [vmem:[%s992_s2 + $0x10] sm:$0xff]  }
   0x5   :  { %661 = vmatprep.subr.bf16.mxu1 %v210_v5  ;;  %673 = vmatprep.mubr.msk.bf16.mxu1 %vm90_vm2, %v44_v9 }
   0x6   :  { %662 = vmatpush3.bf16.msra.mxu1 %v210_v5  ;;  %657 = vmatprep.mubr.msk.bf16.mxu0 %vm90_vm2, %v44_v9 }
   0x7   :  { %663 = vmatprep.subr.bf16.mxu1 %v707_v4  ;;  %645 = vmatprep.subr.bf16.mxu0 %v102_v11 }
   0x8   :  { %646 = vmatpush3.bf16.msra.mxu0 %v102_v11 }
   0x9   :  { %647 = vmatprep.subr.bf16.mxu0 %v713_v12 }
   0xa   :  { %664 = vmatpush3.bf16.msra.mxu1 %v707_v4 }
   0xb   :  { %665 = vmatprep.subr.bf16.mxu1 %v708_v8 }
   0xc   :  { %648 = vmatpush3.bf16.msra.mxu0 %v713_v12 }
   0xd   :  { %649 = vmatprep.subr.bf16.mxu0 %v714_v15 }
   0xe   :  { %666 = vmatpush3.bf16.msra.mxu1 %v708_v8 }
   0xf   :  { %667 = vmatprep.subr.bf16.mxu1 %v709_v13 }
  0x12   :  { %668 = vmatpush3.bf16.msra.mxu1 %v709_v13 }
  0x13   :  { %18 = vsyncpa [#allocation5], 0  ;;  %669 = vmatprep.subr.bf16.mxu1 %v710_v14  ;;  %v711_v17 = vld [vmem:[%s991_s1] sm:$0xff]   ;;  %650 = vmatpush3.bf16.msra.mxu0 %v714_v15  ;;  %v716_v18 = vld [vmem:[%s992_s2 + $0x8] sm:$0xff]   ;;  %vm153_vm3 = vcmask 523264  }
  0x14   :  { %651 = vmatprep.subr.bf16.mxu0 %v715_v16  ;;  %v42_v19 = vld [vmem:[%s990_s0 + $0x10] sm:$0xff]  ;;  %v43_v20 = vld [vmem:[%s990_s0 + $0x18] sm:$0xff]  ;;  %v717_v22 = vld [vmem:[%s992_s2] sm:$0xff]  }
  0x15   :  { %v45_v21 = vpack.c.bf16 %v43_v20, %v42_v19  ;;  %v718_v23 = vld [vmem:[%s994_s4 + $0x18] sm:$0xff]   ;;  %v719_v24 = vld [vmem:[%s994_s4 + $0x10] sm:$0xff]   ;;  %v720_v25 = vld [vmem:[%s994_s4 + $0x8] sm:$0xff]  }
  0x16   :  { %670 = vmatpush3.bf16.msra.mxu1 %v710_v14  ;;  %v721_v26 = vld [vmem:[%s994_s4] sm:$0xff]   ;;  %v722_v27 = vld [vmem:[%s996_s6 + $0x18] sm:$0xff]   ;;  %v723_v47 = vld [vmem:[%s996_s6 + $0x10] sm:$0xff]  }
  0x17   :  { %671 = vmatprep.subr.bf16.mxu1 %v711_v17  ;;  %652 = vmatpush3.bf16.msra.mxu0 %v715_v16  ;;  %v592_v30 = vld [vmem:[%s993_s3] ss:$0 sm:$0xff]  ;;  %v724_v48 = vld [vmem:[%s996_s6 + $0x8] sm:$0xff]  }
  0x18   :  { %653 = vmatprep.subr.bf16.mxu0 %v716_v18  ;;  %v725_v49 = vld [vmem:[%s996_s6] sm:$0xff]  }
  0x19   :  { %v601_v52 = vld [vmem:[%s995_s5] ss:$0 sm:$0xff]  ;;  %s779_s5 = smov [#allocation4]  }
  0x1a   :  { %672 = vmatpush3.bf16.msra.mxu1 %v711_v17  ;;  %v608_v1 = vld [vmem:[%s997_s7] ss:$0 sm:$0xff]  ;;  %s569_s7 = sshll.u32 %s779_s5, 4  ;;  %s570_s7 = int_to_ptr.vmem [resolvable:$true] %s569_s7 }
  0x1b   :  { %654 = vmatpush3.bf16.msra.mxu0 %v716_v18  ;;  %689 = vmatprep.subr.bf16.mxu1 %v722_v27  ;;  %s734_s27 = scalar_lea.vmem %s570_s7, 512  ;;  %p739_p1 = scmp.lt.s32.totalorder %s570_s7, %s570_s7 }
  0x1c   :  { %655 = vmatprep.subr.bf16.mxu0 %v717_v22  ;;  %p735_p0 = scmp.ne.s32.totalorder %s570_s7, %s734_s27  ;;  %p740_p2 = scmp.lt.s32.totalorder %s734_s27, %s734_s27 }
  0x1d   :  { %674 = vmatmul.mubr.msk.bf16.vlgmr.msra.gmra.mxu1 %vm90_vm2, %v45_v21 }
  0x1e   :  { %690 = vmatpush3.bf16.msra.mxu1 %v722_v27  ;;  %p741_p3 = por %p740_p2, %p739_p1 }
  0x1f   :  { %656 = vmatpush3.bf16.msra.mxu0 %v717_v22  ;;  %691 = vmatprep.subr.bf16.mxu1 %v723_v47 }
  0x20   :  { %677 = vmatprep.subr.bf16.mxu0 %v718_v23  ;;  %p742_p4 = pnand %p741_p3, %p735_p0 }
  0x22   :  { %658 = vmatmul.mubr.msk.bf16.vlgmr.msra.gmra.mxu0 %vm90_vm2, %v45_v21  ;;  %692 = vmatpush3.bf16.msra.mxu1 %v723_v47 }
  0x23   :  { %678 = vmatpush3.bf16.msra.mxu0 %v718_v23  ;;  %693 = vmatprep.subr.bf16.mxu1 %v724_v48 }
  0x24   :  { %679 = vmatprep.subr.bf16.mxu0 %v719_v24 }
  0x26   :  { %694 = vmatpush3.bf16.msra.mxu1 %v724_v48 }
  0x27   :  { %680 = vmatpush3.bf16.msra.mxu0 %v719_v24  ;;  %695 = vmatprep.subr.bf16.mxu1 %v725_v49 }
  0x28   :  { %681 = vmatprep.subr.bf16.mxu0 %v720_v25 }
  0x2a   :  { %696 = vmatpush3.bf16.msra.mxu1 %v725_v49 }
  0x2b   :  { %682 = vmatpush3.bf16.msra.mxu0 %v720_v25 }
  0x2c   :  { %683 = vmatprep.subr.bf16.mxu0 %v721_v26 }
  0x2f   :  { %684 = vmatpush3.bf16.msra.mxu0 %v721_v26 }
  0xdd   :  { %v675_v28 = vpop.f32.mrf.mxu1 }
  0xde   :  { %v255_v34 = vadd.f32 %v675_v28, %v592_v30 }
  0xdf   :  { %v246_v29 = vpop.f32.mrf.mxu1 }
  0xe0   :  { %v247_v32 = vadd.f32 %v592_v30, %v246_v29  ;;  %v263_v42 = vmax.f32 %v255_v34, 0.0 }
  0xe1   :  { %v676_v31 = vpop.f32.mrf.mxu1 }
  0xe2   :  { %v258_v33 = vadd.f32 %v676_v31, %v592_v30  ;;  %v659_v36 = vpop.f32.mrf.mxu0  ;;  %v261_v40 = vmax.f32 %v247_v32, 0.0 }
  0xe3   :  { %v249_v35 = vpop.f32.mrf.mxu1  ;;  %156 = vst.msk [vmem:[#allocation4 + $0x10] sm:$0xff] %vm153_vm3, %v659_v36 }
  0xe4   :  { %v250_v37 = vadd.f32 %v592_v30, %v249_v35  ;;  %v264_v38 = vmax.f32 %v258_v33, 0.0  ;;  %v138_v39 = vpop.f32.mrf.mxu0 }
  0xe5   :  { %154 = vst.msk [vmem:[#allocation4] sm:$0xff] %vm153_vm3, %v138_v39 }
  0xe6   :  { %v262_v41 = vmax.f32 %v250_v37, 0.0  ;;  %v660_v43 = vpop.f32.mrf.mxu0  ;;  %v266_v45 = vpack.c.bf16 %v264_v38, %v263_v42 }
  0xe7   :  { %157 = vst.msk [vmem:[#allocation4 + $0x18] sm:$0xff] %vm153_vm3, %v660_v43 }
  0xe8   :  { %v265_v44 = vpack.c.bf16 %v262_v41, %v261_v40  ;;  %v141_v46 = vpop.f32.mrf.mxu0 }
  0xe9   :  { %155 = vst.msk [vmem:[#allocation4 + $0x8] sm:$0xff] %vm153_vm3, %v141_v46 }
  0xea   :  { %685 = vmatprep.mubr.msk.bf16.mxu0 %vm153_vm3, %v265_v44 }
  0xeb   :  { %686 = vmatmul.mubr.msk.bf16.vlgmr.msra.gmra.mxu0 %vm153_vm3, %v266_v45 }
 0x1ab   :  { %v687_v50 = vpop.f32.mrf.mxu0 }
 0x1ac   :  { %v355_v56 = vadd.f32 %v687_v50, %v601_v52 }
 0x1ad   :  { %v346_v51 = vpop.f32.mrf.mxu0 }
 0x1ae   :  { %v347_v54 = vadd.f32 %v601_v52, %v346_v51  ;;  %v363_v62 = vmax.f32 %v355_v56, 0.0 }
 0x1af   :  { %v688_v53 = vpop.f32.mrf.mxu0 }
 0x1b0   :  { %v358_v55 = vadd.f32 %v688_v53, %v601_v52  ;;  %v361_v60 = vmax.f32 %v347_v54, 0.0 }
 0x1b1   :  { %v349_v57 = vpop.f32.mrf.mxu0 }
 0x1b2   :  { %v350_v58 = vadd.f32 %v601_v52, %v349_v57  ;;  %v364_v59 = vmax.f32 %v358_v55, 0.0 }
 0x1b4   :  { %v362_v61 = vmax.f32 %v350_v58, 0.0  ;;  %v366_v0 = vpack.c.bf16 %v364_v59, %v363_v62 }
 0x1b6   :  { %v365_v63 = vpack.c.bf16 %v362_v61, %v361_v60 }
 0x1b8   :  { %697 = vmatprep.mubr.msk.bf16.mxu1 %vm153_vm3, %v365_v63 }
 0x1b9   :  { %698 = vmatmul.mubr.msk.bf16.vlgmr.msra.gmra.mxu1 %vm153_vm3, %v366_v0 }
 0x279   :  { %v699_v2 = vpop.f32.mrf.mxu1 }
 0x27a   :  { %v936_v3 = vadd.f32 %v699_v2, %v608_v1 }
 0x27b   :  { %v446_v4 = vpop.f32.mrf.mxu1 }
 0x27c   :  { %v938_v5 = vadd.f32 %v608_v1, %v446_v4  ;;  %v467_v6 = vsel %vm153_vm3, %v936_v3, 0.0  ;;  %v480_v19 = vmul.f32 %v936_v3, %v936_v3 }
 0x27d   :  { %468 = vadd.xlane.f32.xlu1 %v467_v6  ;;  %v700_v7 = vpop.f32.mrf.mxu1 }
 0x27e   :  { %v942_v8 = vadd.f32 %v700_v7, %v608_v1  ;;  %v461_v9 = vsel %vm153_vm3, %v938_v5, 0.0  ;;  %v478_v10 = vmul.f32 %v938_v5, %v938_v5  ;;  %v488_v21 = vsel %vm153_vm3, %v480_v19, 0.0 }
 0x27f   :  { %v449_v11 = vpop.f32.mrf.mxu1  ;;  %462 = vadd.xlane.f32.xlu0 %v461_v9 }
 0x280   :  { %v948_v12 = vadd.f32 %v608_v1, %v449_v11  ;;  %v470_v13 = vsel %vm153_vm3, %v942_v8, 0.0  ;;  %v482_v14 = vsel %vm153_vm3, %v478_v10, 0.0  ;;  %v481_v17 = vmul.f32 %v942_v8, %v942_v8 }
 0x281   :  { %471 = vadd.xlane.f32.xlu1 %v470_v13 }
 0x282   :  { %v479_v15 = vmul.f32 %v948_v12, %v948_v12  ;;  %v464_v18 = vsel %vm153_vm3, %v948_v12, 0.0  ;;  %v491_v20 = vsel %vm153_vm3, %v481_v17, 0.0 }
 0x283   :  { %483 = vadd.xlane.f32.xlu0 %v482_v14 }
 0x284   :  { %v485_v16 = vsel %vm153_vm3, %v479_v15, 0.0 }
 0x285   :  { %486 = vadd.xlane.f32.xlu1 %v485_v16 }
 0x287   :  { %465 = vadd.xlane.f32.xlu0 %v464_v18 }
 0x289   :  { %492 = vadd.xlane.f32.xlu1 %v491_v20 }
 0x28b   :  { %489 = vadd.xlane.f32.xlu0 %v488_v21 }
 0x28c   :  { %745 = shalt.err (!%p742_p4)
}
 0x28d   :  { %s780_s1 = smov 128   ;;  %s781_s28 = smov 8   ;;  %v615_v56 = vld [vmem:[%s998_s8] ss:$0 sm:$0xff] }
 0x28e   :  { %575 = dma.vmem_to_hbm [thread:$0]  %s570_s7, 512, %s1001_s11, [#allocation5], %s780_s1, %s780_s1, %s781_s28  }
 0x28f   :  { %v616_v58 = vld [vmem:[%s999_s9] ss:$0 sm:$0xff]  ;;  %s782_s8 = smov [#allocation2]  }
 0x290   :  { %s557_s9 = sshll.u32 %s782_s8, 4  ;;  %s558_s9 = int_to_ptr.vmem [resolvable:$true] %s557_s9 }
 0x291   :  { %s754_s13 = scalar_lea.vmem %s558_s9, 512  ;;  %p759_p6 = scmp.lt.s32.totalorder %s558_s9, %s558_s9 }
 0x292   :  { %p755_p5 = scmp.ne.s32.totalorder %s558_s9, %s754_s13  ;;  %p760_p7 = scmp.lt.s32.totalorder %s754_s13, %s754_s13 }
 0x294   :  { %p761_p8 = por %p760_p7, %p759_p6 }
 0x296   :  { %p762_p9 = pnand %p761_p8, %p755_p5 }
 0x306   :  { %v469_v22 = vpop.xlane.xlu1 %468 }
 0x307   :  { %v476_v32 = vmul.f32 0.015625, %v469_v22 }
 0x308   :  { %v463_v23 = vpop.xlane.xlu0 %462 }
 0x309   :  { %v474_v24 = vmul.f32 0.015625, %v463_v23  ;;  %v500_v42 = vmul.f32 %v476_v32, %v476_v32  ;;  %v512_v1 = vsub.f32 %v936_v3, %v476_v32 }
 0x30a   :  { %v472_v25 = vpop.xlane.xlu1 %471 }
 0x30b   :  { %v498_v27 = vmul.f32 %v474_v24, %v474_v24  ;;  %v477_v29 = vmul.f32 0.015625, %v472_v25  ;;  %v510_v54 = vsub.f32 %v938_v5, %v474_v24 }
 0x30c   :  { %v484_v26 = vpop.xlane.xlu0 %483 }
 0x30d   :  { %v494_v28 = vmul.f32 0.015625, %v484_v26  ;;  %v501_v36 = vmul.f32 %v477_v29, %v477_v29  ;;  %v513_v63 = vsub.f32 %v942_v8, %v477_v29 }
 0x30e   :  { %v487_v30 = vpop.xlane.xlu1 %486 }
 0x30f   :  { %v502_v31 = vsub.f32 %v494_v28, %v498_v27  ;;  %v495_v39 = vmul.f32 0.015625, %v487_v30 }
 0x310   :  { %v466_v33 = vpop.xlane.xlu0 %465 }
 0x311   :  { %v506_v34 = vmax.f32 %v502_v31, 0.0  ;;  %v475_v35 = vmul.f32 0.015625, %v466_v33 }
 0x312   :  { %v493_v37 = vpop.xlane.xlu1 %492 }
 0x313   :  { %v514_v38 = vadd.f32 1e-05, %v506_v34  ;;  %v499_v40 = vmul.f32 %v475_v35, %v475_v35  ;;  %v497_v41 = vmul.f32 0.015625, %v493_v37  ;;  %v511_v60 = vsub.f32 %v948_v12, %v475_v35 }
 0x314   :  { %v490_v43 = vpop.xlane.xlu0 %489 }
 0x315   :  { %726 = vrsqrt.f32 %v514_v38  ;;  %v503_v44 = vsub.f32 %v495_v39, %v499_v40  ;;  %v505_v45 = vsub.f32 %v497_v41, %v501_v36  ;;  %v496_v46 = vmul.f32 0.015625, %v490_v43 }
 0x317   :  { %v507_v47 = vmax.f32 %v503_v44, 0.0  ;;  %v509_v48 = vmax.f32 %v505_v45, 0.0  ;;  %v504_v49 = vsub.f32 %v496_v46, %v500_v42 }
 0x319   :  { %v515_v50 = vadd.f32 1e-05, %v507_v47  ;;  %v517_v51 = vadd.f32 1e-05, %v509_v48  ;;  %v508_v52 = vmax.f32 %v504_v49, 0.0 }
 0x31b   :  { %728 = vrsqrt.f32 %v515_v50  ;;  %v516_v53 = vadd.f32 1e-05, %v508_v52 }
 0x31c   :  { %730 = vrsqrt.f32 %v517_v51 }
 0x31d   :  { %732 = vrsqrt.f32 %v516_v53 }
 0x322   :  { %v727_v55 = vpop.eup %726 }
 0x323   :  { %v522_v57 = vmul.f32 %v727_v55, %v510_v54 }
 0x325   :  { %v533_v59 = vmul.f32 %v615_v56, %v522_v57 }
 0x327   :  { %v544_v61 = vadd.f32 %v616_v58, %v533_v59 }
 0x328   :  { %v729_v62 = vpop.eup %728 }
 0x329   :  { %v731_v0 = vpop.eup %730  ;;  %v523_v2 = vmul.f32 %v729_v62, %v511_v60  ;;  %548 = vst.msk [vmem:[#allocation2] sm:$0xff] %vm153_vm3, %v544_v61 }
 0x32a   :  { %v733_v4 = vpop.eup %732  ;;  %v525_v5 = vmul.f32 %v731_v0, %v513_v63 }
 0x32b   :  { %v534_v6 = vmul.f32 %v615_v56, %v523_v2  ;;  %v524_v7 = vmul.f32 %v733_v4, %v512_v1 }
 0x32c   :  { %v536_v9 = vmul.f32 %v615_v56, %v525_v5 }
 0x32d   :  { %v545_v10 = vadd.f32 %v616_v58, %v534_v6  ;;  %v535_v11 = vmul.f32 %v615_v56, %v524_v7 }
 0x32e   :  { %v547_v12 = vadd.f32 %v616_v58, %v536_v9 }
 0x32f   :  { %549 = vst.msk [vmem:[#allocation2 + $0x8] sm:$0xff] %vm153_vm3, %v545_v10  ;;  %v546_v13 = vadd.f32 %v616_v58, %v535_v11 }
 0x330   :  { %551 = vst.msk [vmem:[#allocation2 + $0x18] sm:$0xff] %vm153_vm3, %v547_v12 }
 0x331   :  { %550 = vst.msk [vmem:[#allocation2 + $0x10] sm:$0xff] %vm153_vm3, %v546_v13 }
 0x332   :  { %765 = shalt.err (!%p762_p9)
}
 0x333   :  { %563 = dma.vmem_to_hbm [thread:$0]  %s558_s9, 512, %s1000_s10, [#allocation3], %s780_s1, %s780_s1, %s781_s28  }
 0x334   :  { %774 = dma.done.wait [#allocation3], 512  }
 0x335   :  { %775 = vsyncadd [#allocation3], 4294966784 }
 0x336   :  { %776 = dma.done.wait [#allocation5], 512  }
 0x337   :  { %777 = vsyncadd [#allocation5], 4294966784 }
 0x338   :  { %582 = vsyncpa [#allocation3], 1 }
 0x339   :  { %583 = vsyncpa [#allocation5], 1 }

</bundles_post_ra>
